<compile_context>
chip_gen: v7x
topology: tpu7x:2x2x1
jax: 0.10.0
libtpu: 0.0.40
codegen_flags: <defaults>
</compile_context>

<pallas_src>
import jax
import jax.numpy as jnp
from jax.experimental import pallas as pl
from jax.experimental.pallas import tpu as pltpu


def _linear_kernel(x_ref, wt_ref, b_ref, o_ref):
    # x_ref:  (tm, K)   one row-tile of the flattened input
    # wt_ref: (K, N)    transposed weight, resident across all grid steps
    # b_ref:  (1, N)    bias, resident
    # o_ref:  (tm, N)
    acc = jnp.dot(x_ref[...], wt_ref[...], preferred_element_type=jnp.float32)
    o_ref[...] = (acc + b_ref[...]).astype(o_ref.dtype)


def _round_up(v, m):
    return ((v + m - 1) // m) * m


def _pick_row_tile(M, K, N, itemsize, vmem_budget_bytes=8 * 1024 * 1024):
    """Largest row tile (multiple of 8) whose double-buffered in/out tiles fit budget."""
    if M <= 8:
        return M
    # bytes per row of the pipelined operands (input tile + output tile), x2 buffers
    per_row = 2 * (K + N) * itemsize
    tm = max(8, min(_round_up(M, 8), vmem_budget_bytes // max(per_row, 1)))
    tm = (tm // 8) * 8
    return max(8, min(tm, 1024))


def mlp_regression(x, weight, bias, *, vmem_budget_bytes=8 * 1024 * 1024):
    """y = x @ weight.T + bias over the last axis.

    x:      (..., seq_len) float32
    weight: (pred_len, seq_len)
    bias:   (pred_len,)
    returns (..., pred_len)
    """
    *lead, K = x.shape
    N = weight.shape[0]
    M = 1
    for d in lead:
        M *= d

    # Cheap wrapper glue on tiny operands: flatten rows, transpose weight once so the
    # kernel's contraction is (tm, K) @ (K, N) with N (pred_len) in the lane dim.
    x2 = x.reshape(M, K)
    wt = jnp.transpose(weight)          # (K, N)
    b2 = bias.reshape(1, N)

    itemsize = jnp.dtype(x.dtype).itemsize
    tm = _pick_row_tile(M, K, N, itemsize, vmem_budget_bytes)
    grid = (pl.cdiv(M, tm),)

    out2 = pl.pallas_call(
        _linear_kernel,
        out_shape=jax.ShapeDtypeStruct((M, N), x.dtype),
        grid_spec=pltpu.PrefetchScalarGridSpec(
            num_scalar_prefetch=0,
            grid=grid,
            in_specs=[
                # row tile of the input; last dim equals full K (legal for any K)
                pl.BlockSpec((tm, K), lambda i: (i, 0)),
                # weight / bias: whole arrays, resident across the whole grid
                pl.BlockSpec((K, N), lambda i: (0, 0)),
                pl.BlockSpec((1, N), lambda i: (0, 0)),
            ],
            out_specs=pl.BlockSpec((tm, N), lambda i: (i, 0)),
        ),
        compiler_params=pltpu.CompilerParams(
            # single row axis, independent tiles -> megacore / v7x dual-TC sharding
            dimension_semantics=("parallel",),
        ),
        cost_estimate=pl.CostEstimate(
            flops=2 * M * K * N,
            transcendentals=0,
            bytes_accessed=(M * K + K * N + N + M * N) * itemsize,
        ),
    )(x2, wt, b2)

    return out2.reshape(*lead, N)


def mlp_regression_reference(x, weight, bias):
    """Pure-JAX reference mirroring the PyTorch forward."""
    return jnp.matmul(x, jnp.transpose(weight)) + bias


if __name__ == "__main__":
    key = jax.random.PRNGKey(0)
    k_x, k_b = jax.random.split(key)

    # Small shapes consistent with the module: x (B, C, seq_len) -> (B, C, pred_len)
    B, C = 2, 4
    seq_len, pred_len = 16, 8

    x = jax.random.normal(k_x, (B, C, seq_len), dtype=jnp.float32)

    # Module init: weight = 1/seq_len * ones; bias = nn.Linear default U(-1/sqrt(fan_in), +)
    weight = (1.0 / seq_len) * jnp.ones((pred_len, seq_len), dtype=jnp.float32)
    bound = 1.0 / (seq_len ** 0.5)
    bias = jax.random.uniform(
        k_b, (pred_len,), minval=-bound, maxval=bound, dtype=jnp.float32
    )

    out = mlp_regression(x, weight, bias)
    out = jax.block_until_ready(out)

    ref = mlp_regression_reference(x, weight, bias)
    assert out.shape == (B, C, pred_len), out.shape
    assert jnp.allclose(out, ref, atol=1e-5, rtol=1e-5)

    print("KERNEL_OK")
</pallas_src>

<mosaic_0001>
module attributes {stable_mosaic.version = 11 : i64} {
  func.func @_linear_kernel(%arg0: i32, %arg1: memref<8x16xf32, #tpu.memory_space<vmem>>, %arg2: memref<16x8xf32, #tpu.memory_space<vmem>>, %arg3: memref<1x8xf32, #tpu.memory_space<vmem>>, %arg4: memref<8x8xf32, #tpu.memory_space<vmem>>) attributes {dimension_semantics = [#tpu.dimension_semantics<parallel>], iteration_bounds = array<i64: 1>, scalar_prefetch = 0 : i64, scratch_operands = 0 : i64, tpu.core_type = #tpu.core_type<tc>, window_params = [{transform_indices = @transform_0, window_bounds = array<i64: 8, 16>}, {pipeline_mode = #tpu.pipeline_mode<synchronous>, transform_indices = @transform_1, window_bounds = array<i64: 16, 8>}, {pipeline_mode = #tpu.pipeline_mode<synchronous>, transform_indices = @transform_2, window_bounds = array<i64: 1, 8>}, {transform_indices = @transform_3, window_bounds = array<i64: 8, 8>}]} {
    %c0 = arith.constant 0 : index
    %c0_0 = arith.constant 0 : index
    %0 = vector.load %arg1[%c0, %c0_0] : memref<8x16xf32, #tpu.memory_space<vmem>>, vector<8x16xf32>
    %c0_1 = arith.constant 0 : index
    %c0_2 = arith.constant 0 : index
    %1 = vector.load %arg2[%c0_1, %c0_2] : memref<16x8xf32, #tpu.memory_space<vmem>>, vector<16x8xf32>
    %cst = arith.constant dense<0.000000e+00> : vector<8x8xf32>
    %2 = tpu.matmul %0, %1, %cst {dimension_numbers = #tpu.dot_dimension_numbers<[1], [0], [0], [1], [0, 0, 1, 1], [], []>} : vector<8x16xf32>, vector<16x8xf32>, vector<8x8xf32> -> vector<8x8xf32>
    %c0_3 = arith.constant 0 : index
    %c0_4 = arith.constant 0 : index
    %3 = vector.load %arg3[%c0_3, %c0_4] : memref<1x8xf32, #tpu.memory_space<vmem>>, vector<1x8xf32>
    %4 = vector.broadcast %3 : vector<1x8xf32> to vector<8x8xf32>
    %5 = arith.addf %2, %4 : vector<8x8xf32>
    %c0_5 = arith.constant 0 : index
    %c0_6 = arith.constant 0 : index
    %6 = vector.load %arg4[%c0_5, %c0_6] : memref<8x8xf32, #tpu.memory_space<vmem>>, vector<8x8xf32>
    tpu.vector_store %arg4[%c0_5, %c0_6], %5 {strides = array<i32>} : memref<8x8xf32, #tpu.memory_space<vmem>>, vector<8x8xf32>,
    return
  }
  func.func @transform_0(%arg0: i32) -> (i32, i32) {
    %c0_i32 = arith.constant 0 : i32
    %c0_i32_0 = arith.constant 0 : i32
    return %arg0, %c0_i32 : i32, i32
  }
  func.func @transform_1(%arg0: i32) -> (i32, i32) {
    %c0_i32 = arith.constant 0 : i32
    %c0_i32_0 = arith.constant 0 : i32
    %c0_i32_1 = arith.constant 0 : i32
    return %c0_i32, %c0_i32_0 : i32, i32
  }
  func.func @transform_2(%arg0: i32) -> (i32, i32) {
    %c0_i32 = arith.constant 0 : i32
    %c0_i32_0 = arith.constant 0 : i32
    %c0_i32_1 = arith.constant 0 : i32
    return %c0_i32, %c0_i32_0 : i32, i32
  }
  func.func @transform_3(%arg0: i32) -> (i32, i32) {
    %c0_i32 = arith.constant 0 : i32
    %c0_i32_0 = arith.constant 0 : i32
    return %arg0, %c0_i32 : i32, i32
  }
}

</mosaic_0001>

<bundles_post_ra>
// kernel: tpu_custom_call.1
= control target key start
LH: loop header
LB: loop body
LE: loop exit
PB: predicated region body
PF: predicated region fallthrough
CT: control target
= control target key end

     0   :  { %v158_v2 = vmov 0.0|0.0   ;;  %vm159_vm0 = vmmov 0   ;;  %v160_v4 = vmov 0.0   ;;  %s206_s0 = inlined_call_operand.vmem [shape: f32[8,16], index: 0, kind: input, shape index: {}]   ;;  %s207_s1 = inlined_call_operand.vmem [shape: f32[16,8], index: 1, kind: input, shape index: {}]   ;;  %s208_s2 = inlined_call_operand.vmem [shape: f32[1,8], index: 2, kind: input, shape index: {}]   ;;  %s209_s3 = inlined_call_operand.hbm [shape: f32[8,8], index: 3, kind: output, shape index: {}]  }
   0x1   :  { %v16_v0 = vld [vmem:[%s207_s1] sm:$0xff]  ;;  %v17_v1 = vld [vmem:[%s207_s1 + $0x8] sm:$0xff]  ;;  %127 = vmatprep.subr.bf16.mxu0 %v158_v2  ;;  %124 = vmatprep.mubr.msk.f32.mxu0 %vm159_vm0, %v160_v4 }
   0x2   :  { %v128_v3 = vpack.c.bf16 %v17_v1, %v16_v0 }
   0x3   :  { %8 = vsyncpa [#allocation3], 0  ;;  %v15_v5 = vld [vmem:[%s206_s0] sm:$0xff]  ;;  %vm25_vm1 = vcmask 130048   ;;  %s161_s20 = smov [#allocation2]   ;;  %vm99_vm2 = vcmask 64512  }
   0x4   :  { %129 = vmatpush3.bf16.msra.mxu0 %v128_v3  ;;  %v115_v6 = vld [vmem:[%s208_s2] ss:$0 sm:$0xff]  ;;  %s107_s1 = sshll.u32 %s161_s20, 4  ;;  %s108_s1 = int_to_ptr.vmem [resolvable:$true] %s107_s1 }
   0x5   :  { %s134_s21 = scalar_lea.vmem %s108_s1, 128  ;;  %p139_p1 = scmp.lt.s32.totalorder %s108_s1, %s108_s1 }
   0x6   :  { %p135_p0 = scmp.ne.s32.totalorder %s108_s1, %s134_s21  ;;  %p140_p2 = scmp.lt.s32.totalorder %s134_s21, %s134_s21 }
   0x7   :  { %125 = vmatmul.mubr.msk.f32.vlgmr.msra.gmra.mrb[0].mxu0 %vm25_vm1, %v15_v5 }
   0x8   :  { %p141_p3 = por %p140_p2, %p139_p1 }
   0xa   :  { %p142_p4 = pnand %p141_p3, %p135_p0 }
  0xda   :  { %v95_v7 = vpop.f32.mrb[0].mxu0 }
  0xdb   :  { %v96_v8 = vadd.f32 %v115_v6, %v95_v7  ;;  %v126_v9 = vpop.f32.mrb[1].mxu0 }
  0xdd   :  { %100 = vst.msk [vmem:[#allocation2] sm:$0xff] %vm99_vm2, %v96_v8 }
  0xde   :  { %145 = shalt.err (!%p142_p4)
}
  0xdf   :  { %s146_s23 = scalar_lea.hbm %s209_s3, 128 }
  0xe0   :  { %p147_p5 = scmp.ne.s32.totalorder %s209_s3, %s146_s23  ;;  %p150_p6 = scmp.lt.u32.totalorder %s146_s23, %s209_s3 }
  0xe2   :  { %p152_p7 = pnand %p150_p6, %p147_p5 }
  0xe4   :  { %155 = shalt.err (!%p152_p7)
}
  0xe5   :  { %110 = dma.vmem_to_hbm [thread:$0]  %s108_s1, 128, %s209_s3, [#allocation3]  }
  0xe6   :  { %156 = dma.done.wait [#allocation3], 128  }
  0xe7   :  { %157 = vsyncadd [#allocation3], 4294967168 }
  0xe8   :  { %114 = vsyncpa [#allocation3], 1 }

</bundles_post_ra>
